<compile_context>
chip_gen: v7x
topology: tpu7x:2x2x1
jax: 0.10.0
libtpu: 0.0.40
codegen_flags: <defaults>
</compile_context>

<pallas_src>
import math
from functools import partial

import numpy as np
import jax
import jax.numpy as jnp
from jax.experimental import pallas as pl
from jax.experimental.pallas import tpu as pltpu

D_IN = 64            # input feature dim (D in the original script)
M = 32               # hidden width of the encoder MLP
L = 8                # latent dim (encoder net outputs 2*L)
KP = 128             # padded feature/lane width used inside the kernel
EPS_ROW = 72         # sublane-aligned rows [72:80) of the x slab carry eps^T
SLAB_ROWS = 2 * KP + L   # 264 rows: [W1 block | W2 block | W3(log-var) block]
MAX_TB = 2048        # upper bound on the batch tile

_LOG2PI_CONST = -0.5 * float(L) * math.log(2.0 * math.pi)


def _leaky_relu(h):
    # PyTorch nn.LeakyReLU default negative_slope = 0.01
    return jnp.where(h > 0, h, 0.01 * h)


# ---------------------------------------------------------------------------
# Kernel: transposed MLP (features on sublanes, batch on lanes).
#   p_ref  : (264, 128) packed parameter slab (resident; see pack_params)
#   xe_ref : (128, TB)  rows 0:64 = x^T, row 64 = 1.0 (bias carrier),
#                       rows 72:80 = eps^T, remaining rows zero
#   out_ref: (L, TB)    log_normal_diag(z, mu, log_var) transposed
# ---------------------------------------------------------------------------
def encoder_logprob_kernel(p_ref, xe_ref, out_ref):
    w1 = p_ref[0:KP, :]                   # (128,128): W1^T + b1 col + 1-carrier
    w2 = p_ref[KP:2 * KP, :]              # (128,128): W2^T + b2 col + 1-carrier
    w3 = p_ref[2 * KP:2 * KP + L, :]      # (8,128): -0.5*W3[:,L:]^T, bias col folded

    xe = xe_ref[...]                      # (128, TB)
    # TODO(synk): optional bf16 operand cast for v5e/v6e MXU throughput
    # (w1/w2/xe .astype(jnp.bfloat16)); omitted to keep exact f32 parity.
    h = _leaky_relu(jnp.dot(w1, xe, preferred_element_type=jnp.float32))
    h = _leaky_relu(jnp.dot(w2, h, preferred_element_type=jnp.float32))
    # (L, TB) = -0.5*log_var + (-0.5*L*log(2*pi))   (scale+const folded in slab)
    neg_half_lv_c = jnp.dot(w3, h, preferred_element_type=jnp.float32)

    eps = xe[EPS_ROW:EPS_ROW + L, :]      # eps^T rides in the x slab's padding
    out_ref[...] = (neg_half_lv_c - 0.5 * eps * eps).astype(out_ref.dtype)


# ---------------------------------------------------------------------------
# One-time (host-side, numpy) parameter packing: single (264,128) f32 slab.
# ---------------------------------------------------------------------------
def pack_params(params):
    """Layer-1 rows [0,128):   [0:M,0:D]=w1^T, [0:M,D]=b1, [M,D]=1 (carrier)
       Layer-2 rows [128,256): [0:M,0:M]=w2^T, [0:M,M]=b2, [M,M]=1 (carrier)
       Layer-3 rows [256,264): log-var half only, pre-scaled by -0.5 with the
                               -0.5*L*log(2*pi) constant folded into the bias
                               column (the carrier row is 1 so it lands as +C).
    """
    w1, b1, w2, b2, w3, b3 = (np.asarray(p, np.float32) for p in params)
    slab = np.zeros((SLAB_ROWS, KP), np.float32)
    # layer 1
    slab[0:M, 0:D_IN] = w1.T
    slab[0:M, D_IN] = b1
    slab[M, D_IN] = 1.0
    # layer 2
    slab[KP:KP + M, 0:M] = w2.T
    slab[KP:KP + M, M] = b2
    slab[KP + M, M] = 1.0
    # layer 3 (only the log_var half of chunk(h_e, 2, dim=1) is live)
    slab[2 * KP:2 * KP + L, 0:M] = -0.5 * w3[:, L:].T
    slab[2 * KP:2 * KP + L, M] = -0.5 * b3[L:] + _LOG2PI_CONST
    return jnp.asarray(slab)


def _round_up(n, m):
    return -(-n // m) * m


def _choose_tb(batch):
    """Batch tile: multiple of 128, as large as possible up to MAX_TB, but
    keeping grid >= 2 whenever the batch allows it (v7x has 2 TensorCores)."""
    bp = _round_up(batch, 128)
    if bp <= 256:
        return 128                                   # grid = 1 or 2
    tb = min(MAX_TB, (bp // 2 // 128) * 128)         # ~half the batch, aligned
    return max(tb, 128)


# ---------------------------------------------------------------------------
# Jitted wrapper: all layout plumbing fuses into one XLA fusion per side.
# ---------------------------------------------------------------------------
@partial(jax.jit, static_argnames=("tb",))
def _encoder_log_prob_impl(slab, x, eps, tb):
    b = x.shape[0]
    bp = _round_up(b, tb)
    pad = bp - b

    xt = x.T                                         # (64, b)
    et = eps.T                                       # (L, b)
    if pad:
        xt = jnp.pad(xt, ((0, 0), (0, pad)))
        et = jnp.pad(et, ((0, 0), (0, pad)))

    # (128, bp) input slab: x^T | carrier-1 row | zeros | eps^T | zeros
    xe = jnp.concatenate(
        [xt,
         jnp.ones((1, bp), x.dtype),                 # row 64: bias carrier
         jnp.zeros((EPS_ROW - D_IN - 1, bp), x.dtype),
         et,                                         # rows 72:80
         jnp.zeros((KP - EPS_ROW - L, bp), x.dtype)],
        axis=0)

    out_t = pl.pallas_call(
        encoder_logprob_kernel,
        out_shape=jax.ShapeDtypeStruct((L, bp), jnp.float32),
        grid_spec=pltpu.PrefetchScalarGridSpec(
            num_scalar_prefetch=0,
            grid=(bp // tb,),
            in_specs=[
                # constant block index -> slab stays resident, no re-DMA/step
                pl.BlockSpec((SLAB_ROWS, KP), lambda i: (0, 0)),
                pl.BlockSpec((KP, tb), lambda i: (0, i)),     # x/eps slab tile
            ],
            out_specs=pl.BlockSpec((L, tb), lambda i: (0, i)),  # lane-dense out
        ),
        compiler_params=pltpu.CompilerParams(
            dimension_semantics=("parallel",)),
    )(slab, xe)

    return out_t[:, :b].T                            # back to PyTorch (B, L)


def encoder_log_prob(slab, x, eps):
    """slab: packed params (264,128); x: (B, D_IN); eps: (B, L) -> (B, L)."""
    return _encoder_log_prob_impl(slab, x, eps, _choose_tb(x.shape[0]))


# ---------------------------------------------------------------------------
# Pure-JAX reference: the full, un-simplified PyTorch forward path.
# ---------------------------------------------------------------------------
def reference_log_prob(x, params, eps):
    hp = jax.lax.Precision.HIGHEST
    w1, b1, w2, b2, w3, b3 = params
    h = _leaky_relu(jnp.dot(x, w1, precision=hp) + b1)
    h = _leaky_relu(jnp.dot(h, w2, precision=hp) + b2)
    h_e = jnp.dot(h, w3, precision=hp) + b3
    mu, log_var = h_e[:, :L], h_e[:, L:]
    std = jnp.exp(0.5 * log_var)
    z = mu + std * eps
    return (-0.5 * L * jnp.log(2.0 * jnp.pi)
            - 0.5 * log_var
            - 0.5 * jnp.exp(-log_var) * (z - mu) ** 2.0)


def init_params(key):
    k1, k2, k3, k4, k5, k6 = jax.random.split(key, 6)
    w1 = jax.random.normal(k1, (D_IN, M), jnp.float32) * (1.0 / math.sqrt(D_IN))
    b1 = jax.random.normal(k4, (M,), jnp.float32) * 0.05
    w2 = jax.random.normal(k2, (M, M), jnp.float32) * (1.0 / math.sqrt(M))
    b2 = jax.random.normal(k5, (M,), jnp.float32) * 0.05
    w3 = jax.random.normal(k3, (M, 2 * L), jnp.float32) * (1.0 / math.sqrt(M))
    b3 = jax.random.normal(k6, (2 * L,), jnp.float32) * 0.05
    return (w1, b1, w2, b2, w3, b3)


if __name__ == "__main__":
    key = jax.random.PRNGKey(0)
    kx, kparams, ke = jax.random.split(key, 3)

    B = 256   # 2 batch tiles of 128 -> grid=(2,) so both v7x TensorCores work
    x = jax.random.normal(kx, (B, D_IN), jnp.float32)
    params = init_params(kparams)
    # TODO(synk): torch.randn_like(std) is sampled inside the module; here the
    # reparameterization noise is generated outside the kernel for determinism.
    eps = jax.random.normal(ke, (B, L), jnp.float32)

    slab = pack_params(params)          # packed ONCE, not per call

    out = encoder_log_prob(slab, x, eps)
    out = jax.block_until_ready(out)

    ref = reference_log_prob(x, params, eps)
    assert out.shape == (B, L)
    assert jnp.allclose(out, ref, atol=5e-5, rtol=1e-5), "mismatch vs JAX reference"
    print("KERNEL_OK")
</pallas_src>

<mosaic_0001>
module attributes {stable_mosaic.version = 11 : i64} {
  func.func @encoder_logprob_kernel(%arg0: i32, %arg1: memref<264x128xf32, #tpu.memory_space<vmem>>, %arg2: memref<128x128xf32, #tpu.memory_space<vmem>>, %arg3: memref<8x128xf32, #tpu.memory_space<vmem>>) attributes {dimension_semantics = [#tpu.dimension_semantics<parallel>], iteration_bounds = array<i64: 2>, scalar_prefetch = 0 : i64, scratch_operands = 0 : i64, tpu.core_type = #tpu.core_type<tc>, window_params = [{pipeline_mode = #tpu.pipeline_mode<synchronous>, transform_indices = @transform_0, window_bounds = array<i64: 264, 128>}, {transform_indices = @transform_1, window_bounds = array<i64: 128, 128>}, {transform_indices = @transform_2, window_bounds = array<i64: 8, 128>}]} {
    %c0 = arith.constant 0 : index
    %c0_0 = arith.constant 0 : index
    %0 = vector.load %arg1[%c0, %c0_0] : memref<264x128xf32, #tpu.memory_space<vmem>>, vector<128x128xf32>
    %c128 = arith.constant 128 : index
    %c0_1 = arith.constant 0 : index
    %1 = vector.load %arg1[%c128, %c0_1] : memref<264x128xf32, #tpu.memory_space<vmem>>, vector<128x128xf32>
    %c256 = arith.constant 256 : index
    %c0_2 = arith.constant 0 : index
    %2 = vector.load %arg1[%c256, %c0_2] : memref<264x128xf32, #tpu.memory_space<vmem>>, vector<8x128xf32>
    %c0_3 = arith.constant 0 : index
    %c0_4 = arith.constant 0 : index
    %3 = vector.load %arg2[%c0_3, %c0_4] : memref<128x128xf32, #tpu.memory_space<vmem>>, vector<128x128xf32>
    %cst = arith.constant dense<0.000000e+00> : vector<128x128xf32>
    %4 = tpu.matmul %0, %3, %cst {dimension_numbers = #tpu.dot_dimension_numbers<[1], [0], [0], [1], [0, 0, 1, 1], [], []>} : vector<128x128xf32>, vector<128x128xf32>, vector<128x128xf32> -> vector<128x128xf32>
    %cst_5 = arith.constant 0.000000e+00 : f32
    %5 = vector.broadcast %cst_5 : f32 to vector<128x128xf32>
    %6 = arith.cmpf ogt, %4, %5 : vector<128x128xf32>
    %cst_6 = arith.constant 0.00999999977 : f32
    %7 = vector.broadcast %cst_6 : f32 to vector<128x128xf32>
    %8 = arith.mulf %7, %4 : vector<128x128xf32>
    %9 = arith.select %6, %4, %8 : vector<128x128xi1>, vector<128x128xf32>
    %cst_7 = arith.constant dense<0.000000e+00> : vector<128x128xf32>
    %10 = tpu.matmul %1, %9, %cst_7 {dimension_numbers = #tpu.dot_dimension_numbers<[1], [0], [0], [1], [0, 0, 1, 1], [], []>} : vector<128x128xf32>, vector<128x128xf32>, vector<128x128xf32> -> vector<128x128xf32>
    %cst_8 = arith.constant 0.000000e+00 : f32
    %11 = vector.broadcast %cst_8 : f32 to vector<128x128xf32>
    %12 = arith.cmpf ogt, %10, %11 : vector<128x128xf32>
    %cst_9 = arith.constant 0.00999999977 : f32
    %13 = vector.broadcast %cst_9 : f32 to vector<128x128xf32>
    %14 = arith.mulf %13, %10 : vector<128x128xf32>
    %15 = arith.select %12, %10, %14 : vector<128x128xi1>, vector<128x128xf32>
    %cst_10 = arith.constant dense<0.000000e+00> : vector<8x128xf32>
    %16 = tpu.matmul %2, %15, %cst_10 {dimension_numbers = #tpu.dot_dimension_numbers<[1], [0], [0], [1], [0, 0, 1, 1], [], []>} : vector<8x128xf32>, vector<128x128xf32>, vector<8x128xf32> -> vector<8x128xf32>
    %17 = vector.extract_strided_slice %3 {offsets = [72, 0], sizes = [8, 128], strides = [1, 1]} : vector<128x128xf32> to vector<8x128xf32>
    %cst_11 = arith.constant 5.000000e-01 : f32
    %18 = vector.broadcast %cst_11 : f32 to vector<8x128xf32>
    %19 = arith.mulf %18, %17 : vector<8x128xf32>
    %20 = arith.mulf %19, %17 : vector<8x128xf32>
    %21 = arith.subf %16, %20 : vector<8x128xf32>
    %c0_12 = arith.constant 0 : index
    %c0_13 = arith.constant 0 : index
    %22 = vector.load %arg3[%c0_12, %c0_13] : memref<8x128xf32, #tpu.memory_space<vmem>>, vector<8x128xf32>
    tpu.vector_store %arg3[%c0_12, %c0_13], %21 {strides = array<i32>} : memref<8x128xf32, #tpu.memory_space<vmem>>, vector<8x128xf32>,
    return
  }
  func.func @transform_0(%arg0: i32) -> (i32, i32) {
    %c0_i32 = arith.constant 0 : i32
    %c0_i32_0 = arith.constant 0 : i32
    %c0_i32_1 = arith.constant 0 : i32
    return %c0_i32, %c0_i32_0 : i32, i32
  }
  func.func @transform_1(%arg0: i32) -> (i32, i32) {
    %c0_i32 = arith.constant 0 : i32
    %c0_i32_0 = arith.constant 0 : i32
    return %c0_i32, %arg0 : i32, i32
  }
  func.func @transform_2(%arg0: i32) -> (i32, i32) {
    %c0_i32 = arith.constant 0 : i32
    %c0_i32_0 = arith.constant 0 : i32
    return %c0_i32, %arg0 : i32, i32
  }
}

</mosaic_0001>

<bundles_post_ra>
// kernel: _encoder_log_prob_impl.1
= control target key start
LH: loop header
LB: loop body
LE: loop exit
PB: predicated region body
PF: predicated region fallthrough
CT: control target
= control target key end

     0   :  { %7 = vsyncpa [#allocation4], 0  ;;  %s1535_s0 = inlined_call_operand.vmem [shape: f32[264,128], index: 0, kind: input, shape index: {}]   ;;  %s1536_s1 = inlined_call_operand.vmem [shape: f32[128,256], index: 1, kind: input, shape index: {}]   ;;  %s1537_s2 = inlined_call_operand.hbm [shape: f32[8,256], index: 2, kind: output, shape index: {}]  }
   0x1   :  { %9 = vsyncpa [#allocation4 + $0x1], 0  ;;  %s1277_s9 = smov 0   ;;  %s1279_s10 = smov 0  }
   0x2   :  { %s1281_s11 = smov 0   ;;  %s1283_s12 = smov 0  }
   0x3 LB: > { %s823_s13 = sadd.s32 4294967295, %s1256_s12   ;;  %s824_s14 = sadd.s32 4294967294, %s1256_s12   ;;  %s1256_s12 = sphi %s1283_s12, %s1543_s12   ;;  %s1252_s11 = sphi %s1281_s11, %s1542_s11   ;;  %s1248_s10 = sphi %s1279_s10, %s1541_s10   ;;  %s1244_s9 = sphi %s1277_s9, %s1540_s9  }
   0x4   : > { %s1300_s15 = sadd.s32 1, %s1256_s12   ;;  %s43_s16 = sadd.s32 1, %s1252_s11 }
   0x5   : > { %s40_s17 = ssub.s32 %s1256_s12, %s1300_s15  ;;  %p50_p0 = scmp.ne.s32.totalorder %s1252_s11, %s1248_s10 }
   0x6   : > { %p41_p1 = scmp.eq.s32.totalorder %s40_s17, 0  ;;  %p51_p2 = scmp.eq.s32.totalorder %s1256_s12, 0 }
   0x7   : > { %p80_p3 = scmp.eq.s32.totalorder %s823_s13, 1  ;;  %p85_p4 = scmp.ne.s32.totalorder %s1248_s10, %s1244_s9 }
   0x8   : > { %s1313_s18 = scalar_select %p41_p1, %s1252_s11, %s43_s16  }
   0x9   : > { %p52_p5 = por %p51_p2, %p50_p0  ;;  %p1315_p6 = por %p80_p3, %p50_p0 }
   0xa   : > { %p86_p7 = scmp.eq.s32.totalorder %s824_s14, 1  ;;  %p826_p9 = scmp.ge.s32.totalorder %s1256_s12, 2 }
   0xc   : > { %p1319_p8 = por %p86_p7, %p85_p4  ;;  %105 = sbr.rel (%p826_p9) target bundleno = 31 (0x1f), region = 20 }
  0x13   : > { %108 = sbr.rel (!%p52_p5) target bundleno = 31 (0x1f), region = 24  ;;  %s110_s21 = sand.u32 (%p52_p5), 1, %s1252_s11  }
  0x14   : > { %s828_s22 = sshll.u32 (%p52_p5), %s1256_s12, 3  ;;  %s827_s23 = sshll.u32 (%p52_p5), %s110_s21, 7 }
  0x15   : > { %s1331_s26 = scalar_lea.vmem (%p52_p5), %s1536_s1, %s828_s22  ;;  %s112_s27 = scalar_lea.vmem (%p52_p5), [#allocation2], %s827_s23 }
  0x16   : > { %v172_v0 = vld [vmem:[%s1331_s26] sm:$0xff] (%p52_p5)  ;;  %v174_v1 = vld [vmem:[%s1331_s26 + $0x10] sm:$0xff] (%p52_p5) }
  0x17   : > { %v176_v2 = vld [vmem:[%s1331_s26 + $0x20] sm:$0xff] (%p52_p5)  ;;  %173 = vst [vmem:[%s112_s27] sm:$0xff] (%p52_p5), %v172_v0  ;;  %175 = vst [vmem:[%s112_s27 + $0x8] sm:$0xff] (%p52_p5), %v174_v1  ;;  %v178_v3 = vld [vmem:[%s1331_s26 + $0x30] sm:$0xff] (%p52_p5) }
  0x18   : > { %177 = vst [vmem:[%s112_s27 + $0x10] sm:$0xff] (%p52_p5), %v176_v2  ;;  %v180_v4 = vld [vmem:[%s1331_s26 + $0x40] sm:$0xff] (%p52_p5)  ;;  %v182_v5 = vld [vmem:[%s1331_s26 + $0x50] sm:$0xff] (%p52_p5)  ;;  %179 = vst [vmem:[%s112_s27 + $0x18] sm:$0xff] (%p52_p5), %v178_v3 }
  0x19   : > { %181 = vst [vmem:[%s112_s27 + $0x20] sm:$0xff] (%p52_p5), %v180_v4  ;;  %183 = vst [vmem:[%s112_s27 + $0x28] sm:$0xff] (%p52_p5), %v182_v5  ;;  %v184_v6 = vld [vmem:[%s1331_s26 + $0x60] sm:$0xff] (%p52_p5)  ;;  %v186_v7 = vld [vmem:[%s1331_s26 + $0x70] sm:$0xff] (%p52_p5) }
  0x1a   : > { %v188_v8 = vld [vmem:[%s1331_s26 + $0x80] sm:$0xff]  ;;  %185 = vst [vmem:[%s112_s27 + $0x30] sm:$0xff] %v184_v6  ;;  %187 = vst [vmem:[%s112_s27 + $0x38] sm:$0xff] %v186_v7  ;;  %v190_v9 = vld [vmem:[%s1331_s26 + $0x90] sm:$0xff] }
  0x1b   : > { %189 = vst [vmem:[%s112_s27 + $0x40] sm:$0xff] %v188_v8  ;;  %v192_v10 = vld [vmem:[%s1331_s26 + $0xa0] sm:$0xff]  ;;  %v194_v11 = vld [vmem:[%s1331_s26 + $0xb0] sm:$0xff]  ;;  %191 = vst [vmem:[%s112_s27 + $0x48] sm:$0xff] %v190_v9 }
  0x1c   : > { %193 = vst [vmem:[%s112_s27 + $0x50] sm:$0xff] %v192_v10  ;;  %195 = vst [vmem:[%s112_s27 + $0x58] sm:$0xff] %v194_v11  ;;  %v196_v12 = vld [vmem:[%s1331_s26 + $0xc0] sm:$0xff]  ;;  %v198_v13 = vld [vmem:[%s1331_s26 + $0xd0] sm:$0xff] }
  0x1d   : > { %v200_v14 = vld [vmem:[%s1331_s26 + $0xe0] sm:$0xff]  ;;  %197 = vst [vmem:[%s112_s27 + $0x60] sm:$0xff] %v196_v12  ;;  %199 = vst [vmem:[%s112_s27 + $0x68] sm:$0xff] %v198_v13  ;;  %v202_v15 = vld [vmem:[%s1331_s26 + $0xf0] sm:$0xff] }
  0x1e   : > { %201 = vst [vmem:[%s112_s27 + $0x70] sm:$0xff] %v200_v14  ;;  %203 = vst [vmem:[%s112_s27 + $0x78] sm:$0xff] %v202_v15 }
  0x1f PF: > { %p829_p10 = scmp.ge.s32.totalorder %s1256_s12, 1  ;;  %p208_p11 = scmp.lt.s32.totalorder %s1256_s12, 3 }
  0x21   : > { %p209_p12 = pnand %p829_p10, %p208_p11 }
  0x22   : > { %s1352_s28 = sand.u32 (!%p209_p12), 1, %s1248_s10   ;;  %v236_v16 = vld [vmem:[%s1535_s0] sm:$0xff] (!%p209_p12)  ;;  %v237_v41 = vld [vmem:[%s1535_s0 + $0x8] sm:$0xff] (!%p209_p12)  ;;  %v238_v42 = vld [vmem:[%s1535_s0 + $0x10] sm:$0xff] (!%p209_p12)  ;;  %s833_s25 = sshll.u32 (!%p209_p12), %s823_s13, 7 }
  0x23   : > { %212 = sbr.rel (%p209_p12) target bundleno = 799 (0x31f), region = 62  ;;  %s830_s3 = sshll.u32 (!%p209_p12), %s1352_s28, 7  ;;  %949 = vmatprep.mubr.f32.mxu0 (!%p209_p12), %v236_v16  ;;  %v239_v43 = vld [vmem:[%s1535_s0 + $0x18] sm:$0xff] (!%p209_p12)  ;;  %v240_v44 = vld [vmem:[%s1535_s0 + $0x20] sm:$0xff] (!%p209_p12)  ;;  %v241_v45 = vld [vmem:[%s1535_s0 + $0x28] sm:$0xff] (!%p209_p12) }
  0x24   : > { %s1358_s4 = scalar_lea.vmem (!%p209_p12), [#allocation2], %s830_s3  ;;  %v242_v46 = vld [vmem:[%s1535_s0 + $0x30] sm:$0xff] (!%p209_p12)  ;;  %v243_v47 = vld [vmem:[%s1535_s0 + $0x38] sm:$0xff] (!%p209_p12)  ;;  %v244_v48 = vld [vmem:[%s1535_s0 + $0x40] sm:$0xff] (!%p209_p12)  ;;  %s831_s24 = sshll.u32 (!%p209_p12), %s1352_s28, 3 }
  0x25   : > { %v269_v17 = vld [vmem:[%s1358_s4] sm:$0xff] (!%p209_p12)  ;;  %v270_v18 = vld [vmem:[%s1358_s4 + $0x8] sm:$0xff] (!%p209_p12)  ;;  %v271_v19 = vld [vmem:[%s1358_s4 + $0x10] sm:$0xff] (!%p209_p12)  ;;  %s235_s26 = scalar_lea.vmem (!%p209_p12), [#allocation3], %s831_s24  ;;  %s1491_s3 = scalar_lea.hbm (!%p209_p12), %s1537_s2, %s833_s25 }
  0x26   : > { %v1064_v20 = vpack.c.bf16 (!%p209_p12), %v270_v18, %v269_v17  ;;  %v272_v21 = vld [vmem:[%s1358_s4 + $0x18] sm:$0xff] (!%p209_p12)  ;;  %v273_v23 = vld [vmem:[%s1358_s4 + $0x20] sm:$0xff] (!%p209_p12)  ;;  %v274_v24 = vld [vmem:[%s1358_s4 + $0x28] sm:$0xff] (!%p209_p12)  ;;  %s759_s27 = sshll.u32 (!%p209_p12), %s235_s26, 4  ;;  %s1261_s13 = smov (!%p209_p12), [#allocation3]   ;;  %s1493_s27 = int_to_ptr.vmem [resolvable:$true] %s759_s27 }
  0x27   : > { %v1068_v22 = vpack.c.bf16 (!%p209_p12), %v272_v21, %v271_v19  ;;  %v1072_v25 = vpack.c.bf16 (!%p209_p12), %v274_v24, %v273_v23  ;;  %v275_v26 = vld [vmem:[%s1358_s4 + $0x30] sm:$0xff] (!%p209_p12)  ;;  %v276_v27 = vld [vmem:[%s1358_s4 + $0x38] sm:$0xff] (!%p209_p12)  ;;  %v277_v29 = vld [vmem:[%s1358_s4 + $0x40] sm:$0xff] (!%p209_p12)  ;;  %s1194_s5 = scalar_lea.vmem (!%p209_p12), %s1493_s27, 128  ;;  %s1198_s6 = sshll.u32 (!%p209_p12), %s1261_s13, 4  ;;  %s1199_s6 = int_to_ptr.vmem [resolvable:$false] %s1198_s6 }
  0x28   : > { %1065 = vmatprep.subr.bf16.mxu0 (!%p209_p12), %v1064_v20  ;;  %v1076_v28 = vpack.c.bf16 (!%p209_p12), %v276_v27, %v275_v26  ;;  %v1370_v30 = vld [vmem:[%s1358_s4 + $0x48] sm:$0xff] (!%p209_p12)  ;;  %v279_v32 = vld [vmem:[%s1358_s4 + $0x50] sm:$0xff] (!%p209_p12)  ;;  %v280_v33 = vld [vmem:[%s1358_s4 + $0x58] sm:$0xff] (!%p209_p12)  ;;  %p1195_p13 = scmp.ne.s32.totalorder (!%p209_p12), %s1493_s27, %s1194_s5  ;;  %s1200_s7 = scalar_lea.vmem (!%p209_p12), %s1199_s6, 256 }
  0x29   : > { %1067 = vmatpush3.bf16.msra.mxu0 (!%p209_p12), %v1064_v20  ;;  %v1080_v31 = vpack.c.bf16 (!%p209_p12), %v1370_v30, %v277_v29  ;;  %v1084_v34 = vpack.c.bf16 (!%p209_p12), %v280_v33, %v279_v32  ;;  %v281_v35 = vld [vmem:[%s1358_s4 + $0x60] sm:$0xff] (!%p209_p12)  ;;  %v282_v36 = vld [vmem:[%s1358_s4 + $0x68] sm:$0xff] (!%p209_p12)  ;;  %v283_v38 = vld [vmem:[%s1358_s4 + $0x70] sm:$0xff] (!%p209_p12)  ;;  %p1201_p2 = scmp.lt.s32.totalorder (!%p209_p12), %s1493_s27, %s1199_s6  ;;  %p1202_p3 = scmp.lt.s32.totalorder (!%p209_p12), %s1200_s7, %s1194_s5 }
  0x2a   : > { %1069 = vmatprep.subr.bf16.mxu0 %v1068_v22  ;;  %v1088_v37 = vpack.c.bf16 %v282_v36, %v281_v35  ;;  %v284_v39 = vld [vmem:[%s1358_s4 + $0x78] sm:$0xff]  ;;  %v245_v49 = vld [vmem:[%s1535_s0 + $0x48] sm:$0xff]  ;;  %v246_v50 = vld [vmem:[%s1535_s0 + $0x50] sm:$0xff]  ;;  %s746_s4 = scalar_lea.sflag [#allocation4], %s1352_s28  ;;  %p1196_p0 = pnand %p1195_p13, %p1315_p6 }
  0x2b   : > { %v1092_v40 = vpack.c.bf16 %v284_v39, %v283_v38  ;;  %v247_v51 = vld [vmem:[%s1535_s0 + $0x58] sm:$0xff]  ;;  %v248_v52 = vld [vmem:[%s1535_s0 + $0x60] sm:$0xff]  ;;  %v249_v53 = vld [vmem:[%s1535_s0 + $0x68] sm:$0xff]  ;;  %p1203_p4 = por %p1202_p3, %p1201_p2 }
  0x2c   : > { %v250_v54 = vld [vmem:[%s1535_s0 + $0x70] sm:$0xff]  ;;  %v251_v55 = vld [vmem:[%s1535_s0 + $0x78] sm:$0xff]  ;;  %v252_v56 = vld [vmem:[%s1535_s0 + $0x80] sm:$0xff]  ;;  %p1197_p1 = pneg %p1196_p0 }
  0x2d   : > { %1071 = vmatpush3.bf16.msra.mxu0 %v1068_v22  ;;  %1005 = vmatprep.mubr.f32.mxu1 %v252_v56  ;;  %v259_v56 = vld [vmem:[%s1535_s0 + $0xb8] sm:$0xff] }
  0x2e   : > { %1073 = vmatprep.subr.bf16.mxu0 %v1072_v25  ;;  %p1204_p5 = pnand %p1203_p4, %p1197_p1 }
  0x31   : > { %1075 = vmatpush3.bf16.msra.mxu0 %v1072_v25 }
  0x32   : > { %1077 = vmatprep.subr.bf16.mxu0 %v1076_v28 }
  0x35   : > { %1079 = vmatpush3.bf16.msra.mxu0 %v1076_v28 }
  0x36   : > { %1081 = vmatprep.subr.bf16.mxu0 %v1080_v31 }
  0x39   : > { %1083 = vmatpush3.bf16.msra.mxu0 %v1080_v31 }
  0x3a   : > { %1085 = vmatprep.subr.bf16.mxu0 %v1084_v34 }
  0x3d   : > { %1087 = vmatpush3.bf16.msra.mxu0 %v1084_v34 }
  0x3e   : > { %1089 = vmatprep.subr.bf16.mxu0 %v1088_v37 }
  0x41   : > { %1091 = vmatpush3.bf16.msra.mxu0 %v1088_v37 }
  0x42   : > { %1093 = vmatprep.subr.bf16.mxu0 %v1092_v40 }
  0x45   : > { %1095 = vmatpush3.bf16.msra.mxu0 %v1092_v40 }
  0x48   : > { %950 = vmatmul.mubr.f32.vlgmr.msra.gmra.mrb[0].mxu0 %v237_v41 }
  0x49   : > { %952 = vmatprep.mubr.f32.mxu0 %v238_v42 }
  0x4c   : > { %953 = vmatmul.mubr.f32.gmra.mrb[2].mxu0 %v239_v43 }
  0x4d   : > { %955 = vmatprep.mubr.f32.mxu0 %v240_v44 }
  0x50   : > { %956 = vmatmul.mubr.f32.gmra.mrb[4].mxu0 %v241_v45 }
  0x51   : > { %958 = vmatprep.mubr.f32.mxu0 %v242_v46 }
  0x54   : > { %959 = vmatmul.mubr.f32.gmra.mrb[6].mxu0 %v243_v47 }
  0x55   : > { %961 = vmatprep.mubr.f32.mxu0 %v244_v48 }
  0x58   : > { %962 = vmatmul.mubr.f32.gmra.mrb[8].mxu0 %v245_v49 }
  0x59   : > { %964 = vmatprep.mubr.f32.mxu0 %v246_v50  ;;  %v253_v50 = vld [vmem:[%s1535_s0 + $0x88] sm:$0xff] }
  0x5c   : > { %965 = vmatmul.mubr.f32.gmra.mrb[10].mxu0 %v247_v51  ;;  %v254_v51 = vld [vmem:[%s1535_s0 + $0x90] sm:$0xff] }
  0x5d   : > { %967 = vmatprep.mubr.f32.mxu0 %v248_v52  ;;  %v255_v52 = vld [vmem:[%s1535_s0 + $0x98] sm:$0xff] }
  0x60   : > { %968 = vmatmul.mubr.f32.gmra.mrb[12].mxu0 %v249_v53  ;;  %v256_v53 = vld [vmem:[%s1535_s0 + $0xa0] sm:$0xff] }
  0x61   : > { %970 = vmatprep.mubr.f32.mxu0 %v250_v54  ;;  %v257_v54 = vld [vmem:[%s1535_s0 + $0xa8] sm:$0xff] }
  0x64   : > { %971 = vmatmul.mubr.f32.gmra.mrb[14].mxu0 %v251_v55  ;;  %v258_v55 = vld [vmem:[%s1535_s0 + $0xb0] sm:$0xff] }
 0x11b   : > { %v951_v57 = vpop.f32.mrb[0].mxu0 }
 0x11c   : > { %vm431_vm0 = vcmp.gt.f32.partialorder %v951_v57, 0.0  ;;  %v447_v58 = vmul.f32 0.01, %v951_v57  ;;  %v351_v59 = vpop.f32.mrb[1].mxu0 }
 0x11d   : > { %vm430_vm1 = vcmp.gt.f32.partialorder %v351_v59, 0.0  ;;  %v446_v60 = vmul.f32 0.01, %v351_v59 }
 0x11e   : > { %v463_v61 = vsel %vm431_vm0, %v951_v57, %v447_v58  ;;  %v260_v57 = vld [vmem:[%s1535_s0 + $0xc0] sm:$0xff]  ;;  %v261_v58 = vld [vmem:[%s1535_s0 + $0xc8] sm:$0xff]  ;;  %vm1259_vm0 = vmmov 0  }
 0x11f   : > { %v954_v62 = vpop.f32.mrb[2].mxu0  ;;  %v462_v63 = vsel %vm430_vm1, %v351_v59, %v446_v60  ;;  %v262_v59 = vld [vmem:[%s1535_s0 + $0xd0] sm:$0xff]  ;;  %v263_v60 = vld [vmem:[%s1535_s0 + $0xd8] sm:$0xff] }
 0x120   : > { %vm433_vm2 = vcmp.gt.f32.partialorder %v954_v62, 0.0  ;;  %v449_v0 = vmul.f32 0.01, %v954_v62  ;;  %v361_v1 = vpop.f32.mrb[3].mxu0  ;;  %v1096_v2 = vpack.c.bf16 %v463_v61, %v462_v63  ;;  %v264_v61 = vld [vmem:[%s1535_s0 + $0xe0] sm:$0xff]  ;;  %v266_v63 = vld [vmem:[%s1535_s0 + $0xf0] sm:$0xff] }
 0x121   : > { %vm432_vm3 = vcmp.gt.f32.partialorder %v361_v1, 0.0  ;;  %v448_v3 = vmul.f32 0.01, %v361_v1 }
 0x122   : > { %v465_v4 = vsel %vm433_vm2, %v954_v62, %v449_v0  ;;  %1097 = vmatprep.subr.bf16.mxu1 %v1096_v2  ;;  %v265_v62 = vld [vmem:[%s1535_s0 + $0xe8] sm:$0xff]  ;;  %v267_v0 = vld [vmem:[%s1535_s0 + $0xf8] sm:$0xff] }
 0x123   : > { %v464_v5 = vsel %vm432_vm3, %v361_v1, %v448_v3  ;;  %v957_v6 = vpop.f32.mrb[4].mxu0  ;;  %1099 = vmatpush3.bf16.msra.mxu1 %v1096_v2  ;;  %v1258_v1 = vmov 0.0|0.0   ;;  %v1260_v2 = vmov 0.0  }
 0x124   : > { %vm435_vm4 = vcmp.gt.f32.partialorder %v957_v6, 0.0  ;;  %v451_v7 = vmul.f32 0.01, %v957_v6  ;;  %v371_v8 = vpop.f32.mrb[5].mxu0  ;;  %v1100_v9 = vpack.c.bf16 %v465_v4, %v464_v5  ;;  %1128 = vmatprep.subr.bf16.mxu0 %v1258_v1  ;;  %1061 = vmatprep.mubr.msk.f32.mxu0 %vm1259_vm0, %v1260_v2 }
 0x125   : > { %vm434_vm5 = vcmp.gt.f32.partialorder %v371_v8, 0.0  ;;  %v450_v10 = vmul.f32 0.01, %v371_v8 }
 0x126   : > { %v467_v11 = vsel %vm435_vm4, %v957_v6, %v451_v7  ;;  %1101 = vmatprep.subr.bf16.mxu1 %v1100_v9 }
 0x127   : > { %v466_v12 = vsel %vm434_vm5, %v371_v8, %v450_v10  ;;  %v960_v13 = vpop.f32.mrb[6].mxu0  ;;  %1103 = vmatpush3.bf16.msra.mxu1 %v1100_v9 }
 0x128   : > { %vm437_vm6 = vcmp.gt.f32.partialorder %v960_v13, 0.0  ;;  %v453_v14 = vmul.f32 0.01, %v960_v13  ;;  %v381_v15 = vpop.f32.mrb[7].mxu0  ;;  %v1104_v16 = vpack.c.bf16 %v467_v11, %v466_v12 }
 0x129   : > { %vm436_vm7 = vcmp.gt.f32.partialorder %v381_v15, 0.0  ;;  %v452_v17 = vmul.f32 0.01, %v381_v15 }
 0x12a   : > { %v469_v18 = vsel %vm437_vm6, %v960_v13, %v453_v14  ;;  %1105 = vmatprep.subr.bf16.mxu1 %v1104_v16 }
 0x12b   : > { %v468_v19 = vsel %vm436_vm7, %v381_v15, %v452_v17  ;;  %v963_v20 = vpop.f32.mrb[8].mxu0  ;;  %1107 = vmatpush3.bf16.msra.mxu1 %v1104_v16 }
 0x12c   : > { %vm439_vm8 = vcmp.gt.f32.partialorder %v963_v20, 0.0  ;;  %v455_v21 = vmul.f32 0.01, %v963_v20  ;;  %v391_v22 = vpop.f32.mrb[9].mxu0  ;;  %v1108_v23 = vpack.c.bf16 %v469_v18, %v468_v19 }
 0x12d   : > { %vm438_vm9 = vcmp.gt.f32.partialorder %v391_v22, 0.0  ;;  %v454_v24 = vmul.f32 0.01, %v391_v22 }
 0x12e   : > { %v471_v25 = vsel %vm439_vm8, %v963_v20, %v455_v21  ;;  %1109 = vmatprep.subr.bf16.mxu1 %v1108_v23 }
 0x12f   : > { %v470_v26 = vsel %vm438_vm9, %v391_v22, %v454_v24  ;;  %v966_v27 = vpop.f32.mrb[10].mxu0  ;;  %1111 = vmatpush3.bf16.msra.mxu1 %v1108_v23 }
 0x130   : > { %vm441_vm10 = vcmp.gt.f32.partialorder %v966_v27, 0.0  ;;  %v457_v28 = vmul.f32 0.01, %v966_v27  ;;  %v401_v29 = vpop.f32.mrb[11].mxu0  ;;  %v1112_v31 = vpack.c.bf16 %v471_v25, %v470_v26 }
 0x131   : > { %vm440_vm11 = vcmp.gt.f32.partialorder %v401_v29, 0.0  ;;  %v456_v32 = vmul.f32 0.01, %v401_v29 }
 0x132   : > { %v473_v33 = vsel %vm441_vm10, %v966_v27, %v457_v28  ;;  %1113 = vmatprep.subr.bf16.mxu1 %v1112_v31 }
 0x133   : > { %v472_v34 = vsel %vm440_vm11, %v401_v29, %v456_v32  ;;  %v969_v35 = vpop.f32.mrb[12].mxu0  ;;  %1115 = vmatpush3.bf16.msra.mxu1 %v1112_v31 }
 0x134   : > { %vm443_vm12 = vcmp.gt.f32.partialorder %v969_v35, 0.0  ;;  %v459_v36 = vmul.f32 0.01, %v969_v35  ;;  %v411_v37 = vpop.f32.mrb[13].mxu0  ;;  %v1116_v38 = vpack.c.bf16 %v473_v33, %v472_v34 }
 0x135   : > { %vm442_vm13 = vcmp.gt.f32.partialorder %v411_v37, 0.0  ;;  %v458_v39 = vmul.f32 0.01, %v411_v37 }
 0x136   : > { %v475_v40 = vsel %vm443_vm12, %v969_v35, %v459_v36  ;;  %1117 = vmatprep.subr.bf16.mxu1 %v1116_v38 }
 0x137   : > { %v474_v41 = vsel %vm442_vm13, %v411_v37, %v458_v39  ;;  %v972_v42 = vpop.f32.mrb[14].mxu0  ;;  %1119 = vmatpush3.bf16.msra.mxu1 %v1116_v38 }
 0x138   : > { %vm445_vm14 = vcmp.gt.f32.partialorder %v972_v42, 0.0  ;;  %v461_v43 = vmul.f32 0.01, %v972_v42  ;;  %v421_v44 = vpop.f32.mrb[15].mxu0  ;;  %v1120_v45 = vpack.c.bf16 %v475_v40, %v474_v41 }
 0x139   : > { %vm444_vm15 = vcmp.gt.f32.partialorder %v421_v44, 0.0  ;;  %v460_v46 = vmul.f32 0.01, %v421_v44 }
 0x13a   : > { %v477_v47 = vsel %vm445_vm14, %v972_v42, %v461_v43  ;;  %1121 = vmatprep.subr.bf16.mxu1 %v1120_v45 }
 0x13b   : > { %v476_v48 = vsel %vm444_vm15, %v421_v44, %v460_v46  ;;  %1123 = vmatpush3.bf16.msra.mxu1 %v1120_v45 }
 0x13c   : > { %v1124_v49 = vpack.c.bf16 %v477_v47, %v476_v48 }
 0x13e   : > { %1125 = vmatprep.subr.bf16.mxu1 %v1124_v49 }
 0x13f   : > { %1127 = vmatpush3.bf16.msra.mxu1 %v1124_v49 }
 0x142   : > { %1006 = vmatmul.mubr.f32.vlgmr.msra.gmra.mrb[0].mxu1 %v253_v50 }
 0x143   : > { %1008 = vmatprep.mubr.f32.mxu1 %v254_v51 }
 0x146   : > { %1009 = vmatmul.mubr.f32.gmra.mrb[2].mxu1 %v255_v52 }
 0x147   : > { %1011 = vmatprep.mubr.f32.mxu1 %v256_v53 }
 0x14a   : > { %1012 = vmatmul.mubr.f32.gmra.mrb[4].mxu1 %v257_v54 }
 0x14b   : > { %1014 = vmatprep.mubr.f32.mxu1 %v258_v55 }
 0x14e   : > { %1015 = vmatmul.mubr.f32.gmra.mrb[6].mxu1 %v259_v56 }
 0x14f   : > { %1017 = vmatprep.mubr.f32.mxu1 %v260_v57 }
 0x152   : > { %1018 = vmatmul.mubr.f32.gmra.mrb[8].mxu1 %v261_v58 }
 0x153   : > { %1020 = vmatprep.mubr.f32.mxu1 %v262_v59 }
 0x156   : > { %1021 = vmatmul.mubr.f32.gmra.mrb[10].mxu1 %v263_v60  ;;  %v268_v60 = vld [vmem:[%s1535_s0 + $0x100] sm:$0xff] }
 0x157   : > { %1023 = vmatprep.mubr.f32.mxu1 %v264_v61  ;;  %v741_v61 = vmul.f32 0.5, %v1370_v30 }
 0x15a   : > { %1024 = vmatmul.mubr.f32.gmra.mrb[12].mxu1 %v265_v62  ;;  %v742_v62 = vmul.f32 %v741_v61, %v1370_v30 }
 0x15b   : > { %1026 = vmatprep.mubr.f32.mxu1 %v266_v63 }
 0x15e   : > { %1027 = vmatmul.mubr.f32.gmra.mrb[14].mxu1 %v267_v0 }
 0x215   : > { %v1007_v3 = vpop.f32.mrb[0].mxu1 }
 0x216   : > { %vm624_vm1 = vcmp.gt.f32.partialorder %v1007_v3, 0.0  ;;  %v640_v4 = vmul.f32 0.01, %v1007_v3  ;;  %v544_v5 = vpop.f32.mrb[1].mxu1 }
 0x217   : > { %vm623_vm2 = vcmp.gt.f32.partialorder %v544_v5, 0.0  ;;  %v639_v6 = vmul.f32 0.01, %v544_v5 }
 0x218   : > { %v656_v7 = vsel %vm624_vm1, %v1007_v3, %v640_v4 }
 0x219   : > { %v655_v8 = vsel %vm623_vm2, %v544_v5, %v639_v6  ;;  %v1010_v9 = vpop.f32.mrb[2].mxu1 }
 0x21a   : > { %v1129_v10 = vpack.c.bf16 %v656_v7, %v655_v8  ;;  %vm626_vm3 = vcmp.gt.f32.partialorder %v1010_v9, 0.0  ;;  %v642_v11 = vmul.f32 0.01, %v1010_v9  ;;  %v554_v12 = vpop.f32.mrb[3].mxu1 }
 0x21b   : > { %vm625_vm4 = vcmp.gt.f32.partialorder %v554_v12, 0.0  ;;  %v641_v13 = vmul.f32 0.01, %v554_v12 }
 0x21c   : > { %v658_v14 = vsel %vm626_vm3, %v1010_v9, %v642_v11  ;;  %1130 = vmatpush3.bf16.msra.mxu0 %v1129_v10 }
 0x21d   : > { %v657_v15 = vsel %vm625_vm4, %v554_v12, %v641_v13  ;;  %v1013_v16 = vpop.f32.mrb[4].mxu1  ;;  %1131 = vmatprep.subr.bf16.mxu0 %v1258_v1 }
 0x21e   : > { %v1132_v17 = vpack.c.bf16 %v658_v14, %v657_v15  ;;  %vm628_vm5 = vcmp.gt.f32.partialorder %v1013_v16, 0.0  ;;  %v644_v18 = vmul.f32 0.01, %v1013_v16  ;;  %v564_v19 = vpop.f32.mrb[5].mxu1 }
 0x21f   : > { %vm627_vm6 = vcmp.gt.f32.partialorder %v564_v19, 0.0  ;;  %v643_v20 = vmul.f32 0.01, %v564_v19 }
 0x220   : > { %v660_v21 = vsel %vm628_vm5, %v1013_v16, %v644_v18  ;;  %1133 = vmatpush3.bf16.msra.mxu0 %v1132_v17 }
 0x221   : > { %v659_v22 = vsel %vm627_vm6, %v564_v19, %v643_v20  ;;  %v1016_v23 = vpop.f32.mrb[6].mxu1  ;;  %1134 = vmatprep.subr.bf16.mxu0 %v1258_v1 }
 0x222   : > { %v1135_v24 = vpack.c.bf16 %v660_v21, %v659_v22  ;;  %vm630_vm7 = vcmp.gt.f32.partialorder %v1016_v23, 0.0  ;;  %v646_v25 = vmul.f32 0.01, %v1016_v23  ;;  %v574_v26 = vpop.f32.mrb[7].mxu1 }
 0x223   : > { %vm629_vm8 = vcmp.gt.f32.partialorder %v574_v26, 0.0  ;;  %v645_v27 = vmul.f32 0.01, %v574_v26 }
 0x224   : > { %v662_v28 = vsel %vm630_vm7, %v1016_v23, %v646_v25  ;;  %1136 = vmatpush3.bf16.msra.mxu0 %v1135_v24 }
 0x225   : > { %v661_v29 = vsel %vm629_vm8, %v574_v26, %v645_v27  ;;  %v1019_v31 = vpop.f32.mrb[8].mxu1  ;;  %1137 = vmatprep.subr.bf16.mxu0 %v1258_v1 }
 0x226   : > { %v1138_v32 = vpack.c.bf16 %v662_v28, %v661_v29  ;;  %vm632_vm9 = vcmp.gt.f32.partialorder %v1019_v31, 0.0  ;;  %v648_v33 = vmul.f32 0.01, %v1019_v31  ;;  %v584_v34 = vpop.f32.mrb[9].mxu1 }
 0x227   : > { %vm631_vm10 = vcmp.gt.f32.partialorder %v584_v34, 0.0  ;;  %v647_v35 = vmul.f32 0.01, %v584_v34 }
 0x228   : > { %v664_v36 = vsel %vm632_vm9, %v1019_v31, %v648_v33  ;;  %1139 = vmatpush3.bf16.msra.mxu0 %v1138_v32 }
 0x229   : > { %v663_v37 = vsel %vm631_vm10, %v584_v34, %v647_v35  ;;  %v1022_v38 = vpop.f32.mrb[10].mxu1  ;;  %1140 = vmatprep.subr.bf16.mxu0 %v1258_v1 }
 0x22a   : > { %v1141_v39 = vpack.c.bf16 %v664_v36, %v663_v37  ;;  %vm634_vm11 = vcmp.gt.f32.partialorder %v1022_v38, 0.0  ;;  %v650_v40 = vmul.f32 0.01, %v1022_v38  ;;  %v594_v41 = vpop.f32.mrb[11].mxu1 }
 0x22b   : > { %vm633_vm12 = vcmp.gt.f32.partialorder %v594_v41, 0.0  ;;  %v649_v42 = vmul.f32 0.01, %v594_v41 }
 0x22c   : > { %v666_v43 = vsel %vm634_vm11, %v1022_v38, %v650_v40  ;;  %1142 = vmatpush3.bf16.msra.mxu0 %v1141_v39 }
 0x22d   : > { %v665_v44 = vsel %vm633_vm12, %v594_v41, %v649_v42  ;;  %v1025_v45 = vpop.f32.mrb[12].mxu1  ;;  %1143 = vmatprep.subr.bf16.mxu0 %v1258_v1 }
 0x22e   : > { %v1144_v46 = vpack.c.bf16 %v666_v43, %v665_v44  ;;  %vm636_vm13 = vcmp.gt.f32.partialorder %v1025_v45, 0.0  ;;  %v652_v47 = vmul.f32 0.01, %v1025_v45  ;;  %v604_v48 = vpop.f32.mrb[13].mxu1 }
 0x22f   : > { %vm635_vm14 = vcmp.gt.f32.partialorder %v604_v48, 0.0  ;;  %v651_v49 = vmul.f32 0.01, %v604_v48 }
 0x230   : > { %v668_v50 = vsel %vm636_vm13, %v1025_v45, %v652_v47  ;;  %1145 = vmatpush3.bf16.msra.mxu0 %v1144_v46 }
 0x231   : > { %v667_v51 = vsel %vm635_vm14, %v604_v48, %v651_v49  ;;  %v1028_v52 = vpop.f32.mrb[14].mxu1  ;;  %1146 = vmatprep.subr.bf16.mxu0 %v1258_v1 }
 0x232   : > { %v1147_v53 = vpack.c.bf16 %v668_v50, %v667_v51  ;;  %vm638_vm15 = vcmp.gt.f32.partialorder %v1028_v52, 0.0  ;;  %v654_v54 = vmul.f32 0.01, %v1028_v52  ;;  %v614_v55 = vpop.f32.mrb[15].mxu1 }
 0x233   : > { %vm637_vm0 = vcmp.gt.f32.partialorder %v614_v55, 0.0  ;;  %v653_v56 = vmul.f32 0.01, %v614_v55 }
 0x234   : > { %v670_v57 = vsel %vm638_vm15, %v1028_v52, %v654_v54  ;;  %1148 = vmatpush3.bf16.msra.mxu0 %v1147_v53 }
 0x235   : > { %v669_v58 = vsel %vm637_vm0, %v614_v55, %v653_v56  ;;  %1149 = vmatprep.subr.bf16.mxu0 %v1258_v1 }
 0x236   : > { %v1150_v59 = vpack.c.bf16 %v670_v57, %v669_v58 }
 0x238   : > { %1151 = vmatpush3.bf16.msra.mxu0 %v1150_v59 }
 0x23b   : > { %1062 = vmatmul.mubr.f32.vlgmr.msra.gmra.mrb[16].mxu0 %v268_v60 }
 0x30e   : > { %v737_v63 = vpop.f32.mrb[16].mxu0 }
 0x30f   : > { %v743_v0 = vsub.f32 %v737_v63, %v742_v62  ;;  %v1063_v1 = vpop.f32.mrb[17].mxu0 }
 0x311   : > { %744 = vst [vmem:[%s235_s26] sm:$0xff] %v743_v0 }
 0x312   : > { %1207 = shalt.err (!%p1204_p5)
}
 0x313   : > { %s1208_s28 = scalar_lea.hbm %s1491_s3, 128  ;;  %s1212_s16 = scalar_lea.hbm %s1537_s2, 256 }
 0x314   : > { %p1209_p7 = scmp.ne.s32.totalorder %s1491_s3, %s1208_s28  ;;  %p1213_p12 = scmp.lt.u32.totalorder %s1491_s3, %s1537_s2 }
 0x315   : > { %p1214_p13 = scmp.lt.u32.totalorder %s1212_s16, %s1208_s28  ;;  %p1216_p1 = scmp.lt.u32.totalorder %s1208_s28, %s1491_s3 }
 0x316   : > { %p1210_p10 = pnand %p1209_p7, %p1315_p6 }
 0x317   : > { %p1215_p0 = por %p1214_p13, %p1213_p12 }
 0x318   : > { %p1211_p11 = pneg %p1210_p10 }
 0x319   : > { %p1217_p2 = por %p1216_p1, %p1215_p0 }
 0x31b   : > { %p1218_p3 = pnand %p1217_p2, %p1211_p11 }
 0x31d   : > { %1221 = shalt.err (!%p1218_p3)
}
 0x31e   : > { %1152 = dma.vmem_to_hbm [thread:$0]  (%p1315_p6), %s1493_s27, 128, %s1491_s3, %s746_s4  }
 0x31f PF: > { %s771_s22 = sand.u32 1, %s1244_s9   ;;  %p1155_p4 = pnand %p826_p9, %p1319_p8 }
 0x320   : > { %s772_s23 = scalar_lea.sflag [#allocation4], %s771_s22 }
 0x321   : > { %1239 = dma.done.wait (!%p1155_p4), %s772_s23, 128  }
 0x322   : > { %1241 = vsyncadd (!%p1155_p4), %s772_s23, 4294967168  ;;  %p12_p5 = scmp.ge.s32.totalorder %s1300_s15, 4   ;;  %s1540_s9 = smov %s1248_s10 }
 0x323   : > { %s1541_s10 = smov %s1252_s11  ;;  %s1542_s11 = smov %s1313_s18 }
 0x324   : > { %s1543_s12 = smov %s1300_s15  ;;  %14 = sbr.rel (!%p12_p5) target bundleno = 3 (0x3), region = 106 }
 0x32b   :  { %777 = vsyncpa [#allocation4], 1 }
 0x32c   :  { %779 = vsyncpa [#allocation4 + $0x1], 1 }

</bundles_post_ra>
